<compile_context>
chip_gen: v7x
topology: tpu7x:2x2x1
jax: 0.10.0
libtpu: 0.0.40
codegen_flags: <defaults>
</compile_context>

<pallas_src>
import random
from functools import partial

import numpy as np
import jax
import jax.numpy as jnp
from jax.experimental import pallas as pl
from jax.experimental.pallas import tpu as pltpu


# ----------------------------------------------------------------------------
# VMEM budgeting helpers (generation-safe: budget < v7x's 64 MiB physical)
# ----------------------------------------------------------------------------
_VMEM_LIMIT = 48 * 1024 * 1024      # scoped VMEM requested from Mosaic
_STREAM_BUDGET = 20 * 1024 * 1024   # target bytes for double-buffered streams


def _pick_tile(dim, cap, quantum):
    """Largest tile <= cap that divides dim and is a multiple of `quantum`;
    falls back to the full dim (always legal for BlockSpec)."""
    if dim <= cap:
        return dim
    t = (cap // quantum) * quantum
    while t >= quantum:
        if dim % t == 0:
            return t
        t -= quantum
    return dim


def _budget_rows(n_rows, lane_tile, n_big_streams, itemsize=4, quantum=8):
    """Rows-per-step so (streams x 2 buffers x rows x lane_tile x itemsize)
    stays within the stream budget."""
    per_row = 2 * n_big_streams * lane_tile * itemsize
    cap = max(quantum, _STREAM_BUDGET // max(per_row, 1))
    return _pick_tile(n_rows, cap, quantum)


def _cparams(semantics):
    return pltpu.CompilerParams(dimension_semantics=semantics,
                                vmem_limit_bytes=_VMEM_LIMIT)


# ----------------------------------------------------------------------------
# Branch 1: additive Gaussian noise
# ----------------------------------------------------------------------------
def _noise_kernel(seed_ref, x_ref, o_ref, *, sigma):
    # in-kernel PRNG: no HBM read of a noise tensor at all.
    # separate seed components per block (decorrelated streams).
    pltpu.prng_seed(seed_ref[0], pl.program_id(0), pl.program_id(1))
    z = pltpu.stateful_normal(x_ref.shape, jnp.float32)
    o_ref[...] = x_ref[...] + jnp.float32(sigma) * z


def _noise_call(x2, sigma, seed):
    BC, HW = x2.shape
    thw = _pick_tile(HW, 8192, 128)                 # elementwise -> lane-tileable
    tbc = _budget_rows(BC, thw, n_big_streams=2)    # x + out
    grid = (pl.cdiv(BC, tbc), pl.cdiv(HW, thw))
    return pl.pallas_call(
        partial(_noise_kernel, sigma=float(sigma)),
        out_shape=jax.ShapeDtypeStruct((BC, HW), jnp.float32),
        grid_spec=pltpu.PrefetchScalarGridSpec(
            num_scalar_prefetch=1,
            grid=grid,
            in_specs=[pl.BlockSpec((tbc, thw), lambda i, j, seed: (i, j))],
            out_specs=pl.BlockSpec((tbc, thw), lambda i, j, seed: (i, j)),
        ),
        compiler_params=_cparams(("parallel", "parallel")),
    )(jnp.asarray([seed], dtype=jnp.int32), x2)


def _noise_add_kernel(x_ref, n_ref, o_ref):
    o_ref[...] = x_ref[...] + n_ref[...]            # noise already sigma-scaled


def _noise_add_call(x2, noise):
    BC, HW = x2.shape
    thw = _pick_tile(HW, 8192, 128)
    tbc = _budget_rows(BC, thw, n_big_streams=3)    # x + noise + out
    grid = (pl.cdiv(BC, tbc), pl.cdiv(HW, thw))
    blk = lambda: pl.BlockSpec((tbc, thw), lambda i, j: (i, j))
    return pl.pallas_call(
        _noise_add_kernel,
        out_shape=jax.ShapeDtypeStruct((BC, HW), jnp.float32),
        grid=grid,
        in_specs=[blk(), blk()],
        out_specs=blk(),
        compiler_params=_cparams(("parallel", "parallel")),
    )(x2, noise)


_NOISE_OK_CACHE = {}


def _noise_path_ok(BC, HW):
    """One-time cached probe per shape: does the in-kernel PRNG path lower and
    produce a sane N(0,1) sample?  Never re-checked in steady state."""
    key = (int(BC), int(HW))
    if key not in _NOISE_OK_CACHE:
        ok = False
        try:
            z = jnp.zeros((BC, HW), jnp.float32)
            out = np.asarray(jax.block_until_ready(_noise_call(z, 1.0, 1234)))
            ok = (np.isfinite(out).all()
                  and 0.5 < float(out.std()) < 1.5
                  and abs(float(out.mean())) < 0.25)
        except Exception:
            ok = False
        _NOISE_OK_CACHE[key] = ok
    return _NOISE_OK_CACHE[key]


def _apply_noise(x2, sigma, seed):
    BC, HW = x2.shape
    if _noise_path_ok(BC, HW):
        return _noise_call(x2, sigma, seed)
    # Fallback: pre-scaled normal noise (sigma folded by XLA) + VPU add kernel.
    noise = jnp.float32(sigma) * jax.random.normal(
        jax.random.PRNGKey(seed), x2.shape, dtype=jnp.float32)
    return _noise_add_call(x2, noise)


# ----------------------------------------------------------------------------
# Branch 2: random rotation (nearest neighbour gather)
# ----------------------------------------------------------------------------
def _rot_gather_kernel(x_ref, idx_ref, msk_ref, o_ref):
    # idx/msk arrive as a single (1, HW) row; broadcast in-register (free)
    idx = jnp.broadcast_to(idx_ref[...], x_ref.shape)
    g = jnp.take_along_axis(x_ref[...], idx, axis=-1, mode="clip")
    o_ref[...] = g * msk_ref[...]


def _rot_gather_call(x2, src_row, msk_row):
    BC, HW = x2.shape
    tbc = _budget_rows(BC, HW, n_big_streams=2)     # x + out (idx/msk are 1 row)
    return pl.pallas_call(
        _rot_gather_kernel,
        out_shape=jax.ShapeDtypeStruct((BC, HW), jnp.float32),
        grid=(pl.cdiv(BC, tbc),),
        in_specs=[pl.BlockSpec((tbc, HW), lambda i: (i, 0)),
                  pl.BlockSpec((1, HW), lambda i: (0, 0)),   # reused every step
                  pl.BlockSpec((1, HW), lambda i: (0, 0))],
        out_specs=pl.BlockSpec((tbc, HW), lambda i: (i, 0)),
        compiler_params=_cparams(("parallel",)),
    )(x2, src_row, msk_row)


def _rot_onehot_kernel(x_ref, src_ref, msk_ref, o_ref, acc_ref, *, tk):
    # Fallback: out = x @ M, with the (tk, tn) one-hot selection tile built on
    # the fly (never materialized in HBM).
    k = pl.program_id(2)

    @pl.when(k == 0)
    def _init():
        acc_ref[...] = jnp.zeros_like(acc_ref)

    tn = src_ref.shape[-1]
    rows = jax.lax.broadcasted_iota(jnp.int32, (tk, tn), 0) + k * tk
    sel = jnp.where(rows == src_ref[...], msk_ref[...], jnp.float32(0.0))
    acc_ref[...] += jnp.dot(x_ref[...], sel, preferred_element_type=jnp.float32)

    @pl.when(k == pl.num_programs(2) - 1)
    def _done():
        o_ref[...] = acc_ref[...]


def _rot_onehot_call(x2, src_row, msk_row):
    BC, HW = x2.shape
    tn = _pick_tile(HW, 512, 128)
    tk = _pick_tile(HW, 512, 128)
    per_row = (2 * (tk + tn) + tn) * 4              # x, out double-buffered + acc
    cap = max(8, _STREAM_BUDGET // max(per_row, 1))
    tbc = _pick_tile(BC, cap, 8)
    grid = (pl.cdiv(BC, tbc), pl.cdiv(HW, tn), pl.cdiv(HW, tk))
    return pl.pallas_call(
        partial(_rot_onehot_kernel, tk=tk),
        out_shape=jax.ShapeDtypeStruct((BC, HW), jnp.float32),
        grid=grid,
        in_specs=[pl.BlockSpec((tbc, tk), lambda i, j, k: (i, k)),
                  pl.BlockSpec((1, tn), lambda i, j, k: (0, j)),
                  pl.BlockSpec((1, tn), lambda i, j, k: (0, j))],
        out_specs=pl.BlockSpec((tbc, tn), lambda i, j, k: (i, j)),
        scratch_shapes=[pltpu.VMEM((tbc, tn), jnp.float32)],
        compiler_params=_cparams(("parallel", "parallel", "arbitrary")),
    )(x2, src_row, msk_row)


_GATHER_OK_CACHE = {}


def _gather_path_ok(BC, HW):
    """One-time cached probe per shape: arbitrary permutation + non-trivial
    mask, exercising the same lowering as real rotation indices."""
    key = (int(BC), int(HW))
    if key not in _GATHER_OK_CACHE:
        ok = False
        try:
            rs = np.random.RandomState(0)
            x = rs.rand(BC, HW).astype(np.float32)
            src = rs.permutation(HW).astype(np.int32)
            msk = (rs.rand(HW) > 0.3).astype(np.float32)
            got = jax.block_until_ready(_rot_gather_call(
                jnp.asarray(x), jnp.asarray(src)[None, :], jnp.asarray(msk)[None, :]))
            want = x[:, src] * msk[None, :]
            ok = bool(np.allclose(np.asarray(got), want, atol=1e-5))
        except Exception:
            ok = False
        _GATHER_OK_CACHE[key] = ok
    return _GATHER_OK_CACHE[key]


def _rotation_indices(H, W, angle_deg):
    """O(HW) host work: per-output-pixel flat source index + zero-fill mask
    (nearest neighbour, image-center pivot)."""
    theta = np.deg2rad(angle_deg)
    cy, cx = (H - 1) / 2.0, (W - 1) / 2.0
    oi, oj = np.meshgrid(np.arange(H), np.arange(W), indexing="ij")
    yy, xx = oi - cy, oj - cx
    sx = np.cos(theta) * xx + np.sin(theta) * yy + cx
    sy = -np.sin(theta) * xx + np.cos(theta) * yy + cy
    si = np.rint(sy).astype(np.int32)
    sj = np.rint(sx).astype(np.int32)
    valid = (si >= 0) & (si < H) & (sj >= 0) & (sj < W)
    src = np.clip(si, 0, H - 1) * W + np.clip(sj, 0, W - 1)
    return src.reshape(-1).astype(np.int32), valid.reshape(-1).astype(np.float32)


def _apply_rotation(x2, src, valid):
    BC, HW = x2.shape
    src_row = jnp.asarray(src, jnp.int32).reshape(1, HW)
    msk_row = jnp.asarray(valid, jnp.float32).reshape(1, HW)
    if _gather_path_ok(BC, HW):
        return _rot_gather_call(x2, src_row, msk_row)
    # TODO(synk): retire once the lane gather is guaranteed by the Mosaic
    # version in use (this path is O(HW^2) MACs but O(HW) HBM bytes).
    return _rot_onehot_call(x2, src_row, msk_row)


# ----------------------------------------------------------------------------
# Branch 3: Resize([scale, 1]) -> height-only bilinear resize (2-tap VPU lerp)
# ----------------------------------------------------------------------------
def _height_resize_taps(H, scale):
    """Per-output-row (lo, hi, weight) bilinear taps (align_corners=False)."""
    H2 = max(1, int(round(scale * H)))
    taps = []
    for i in range(H2):
        src = (i + 0.5) * (H / H2) - 0.5
        lo = int(np.floor(src))
        w = float(src - lo)
        lo_c = min(max(lo, 0), H - 1)
        hi_c = min(max(lo + 1, 0), H - 1)
        taps.append((lo_c, hi_c, w))
    return taps, H2


def _resize_kernel(x_ref, o_ref, *, taps):
    # Static unrolled 2-tap lerp per output row: pure VPU, memory-bound.
    for i, (lo, hi, w) in enumerate(taps):
        if w <= 0.0 or lo == hi:
            row = x_ref[:, lo, :] if w <= 0.0 else x_ref[:, hi, :]
            o_ref[:, i, :] = row
        else:
            o_ref[:, i, :] = ((1.0 - w) * x_ref[:, lo, :]
                              + w * x_ref[:, hi, :]).astype(o_ref.dtype)


def _apply_resize(x3, scale):
    """x3: (BC, H, W) -> (BC, H2, W); NCHW layout preserved, no transposes."""
    BC, H, W = x3.shape
    taps, H2 = _height_resize_taps(H, scale)
    tw = _pick_tile(W, 512, 128)
    per_row = 2 * (H + H2) * tw * 4                 # in + out, double-buffered
    cap = max(1, _STREAM_BUDGET // max(per_row, 1))
    tbc = _pick_tile(BC, cap, 1)
    grid = (pl.cdiv(BC, tbc), pl.cdiv(W, tw))
    out = pl.pallas_call(
        partial(_resize_kernel, taps=tuple(taps)),
        out_shape=jax.ShapeDtypeStruct((BC, H2, W), jnp.float32),
        grid=grid,
        in_specs=[pl.BlockSpec((tbc, H, tw), lambda i, j: (i, 0, j))],
        out_specs=pl.BlockSpec((tbc, H2, tw), lambda i, j: (i, 0, j)),
        compiler_params=_cparams(("parallel", "parallel")),
    )(x3)
    return out


# ----------------------------------------------------------------------------
# distortionLayer.forward
# ----------------------------------------------------------------------------
def distortion_layer(T_e, seed=None, sigma=0.01, pi=30.0, scale=0.75,
                     _force_branch=None):
    """T_e: (N, C, H, W) float32 (NCHW, matching PyTorch).
    Branch / angle drawn with the host RNG (like the PyTorch module); pass
    `seed` for reproducibility or `_force_branch` to pin a branch."""
    B, C, H, W = T_e.shape
    rng = random.Random(seed) if seed is not None else random
    branch = _force_branch if _force_branch is not None else rng.randint(0, 3)

    x = jnp.asarray(T_e, jnp.float32)

    if branch == 0:                       # nn.Identity: pure pass-through
        return x

    if branch == 1:                       # additive Gaussian noise
        noise_seed = rng.randrange(0, 2**31 - 1)
        out2 = _apply_noise(x.reshape(B * C, H * W), sigma, noise_seed)
        return out2.reshape(B, C, H, W)

    if branch == 2:                       # rotation, angle ~ U(-pi, pi) degrees
        angle = rng.uniform(-pi, pi)
        src, valid = _rotation_indices(H, W, angle)
        out2 = _apply_rotation(x.reshape(B * C, H * W), src, valid)
        return out2.reshape(B, C, H, W)

    # branch == 3: height-only bilinear resize by `scale`
    out3 = _apply_resize(x.reshape(B * C, H, W), scale)
    H2 = out3.shape[1]
    return out3.reshape(B, C, H2, W)


# ----------------------------------------------------------------------------
if __name__ == "__main__":
    key = jax.random.PRNGKey(0)
    T_e = jax.random.normal(key, (2, 4, 16, 16), dtype=jnp.float32)
    B, C, H, W = T_e.shape

    # exercise every branch deterministically
    outs = {}
    for branch in range(4):
        out = distortion_layer(T_e, seed=branch, sigma=0.01, pi=30.0, scale=0.75,
                               _force_branch=branch)
        outs[branch] = jax.block_until_ready(out)

    # --- light sanity checks -------------------------------------------------
    # 0: identity
    assert outs[0].shape == (B, C, H, W) and bool(jnp.array_equal(outs[0], T_e))

    # 1: additive Gaussian noise, sigma = 0.01
    d = np.asarray(outs[1] - T_e).ravel()
    assert outs[1].shape == (B, C, H, W)
    assert 0.5e-2 < float(d.std()) < 1.5e-2
    assert abs(float(d.mean())) < 5e-3

    # 2: rotation — compare the kernel path against a plain-XLA gather reference
    src, valid = _rotation_indices(H, W, 17.3)
    x2 = T_e.reshape(B * C, H * W)
    rot = np.asarray(_apply_rotation(x2, src, valid))
    rot_ref = np.asarray(x2)[:, src] * valid[None, :]
    assert np.allclose(rot, rot_ref, atol=1e-2, rtol=1e-2)
    assert outs[2].shape == (B, C, H, W)

    # 3: height-only bilinear resize by scale = 0.75
    taps, H2 = _height_resize_taps(H, 0.75)
    x3 = np.asarray(T_e).reshape(B * C, H, W)
    res_ref = np.stack([(1.0 - w) * x3[:, lo, :] + w * x3[:, hi, :]
                        for (lo, hi, w) in taps], axis=1)
    assert outs[3].shape == (B, C, H2, W)
    assert np.allclose(np.asarray(outs[3]).reshape(B * C, H2, W), res_ref,
                       atol=1e-4, rtol=1e-4)

    print("KERNEL_OK")
</pallas_src>

<mosaic_0001>
module attributes {stable_mosaic.version = 11 : i64} {
  func.func @_noise_kernel(%arg0: i32, %arg1: i32, %arg2: memref<1xi32, #tpu.memory_space<smem>>, %arg3: memref<8x256xf32, #tpu.memory_space<vmem>>, %arg4: memref<8x256xf32, #tpu.memory_space<vmem>>) attributes {dimension_semantics = [#tpu.dimension_semantics<parallel>, #tpu.dimension_semantics<parallel>], iteration_bounds = array<i64: 1, 1>, scalar_prefetch = 1 : i64, scratch_operands = 0 : i64, tpu.core_type = #tpu.core_type<tc>, window_params = [{transform_indices = @transform_0, window_bounds = array<i64: 8, 256>}, {transform_indices = @transform_1, window_bounds = array<i64: 8, 256>}]} {
    %c0 = arith.constant 0 : index
    %0 = memref.load %arg2[%c0] : memref<1xi32, #tpu.memory_space<smem>>
    "tpu.prng_set_seed_32"(%0, %arg0, %arg1) : (i32, i32, i32) -> ()
    %c0_i32 = arith.constant 0 : i32
    %c0_i32_0 = arith.constant 0 : i32
    %cst = arith.constant -0.99999994 : f32
    %cst_1 = arith.constant 1.000000e+00 : f32
    %1 = vector.broadcast %cst : f32 to vector<1x1xf32>
    %2 = vector.broadcast %cst_1 : f32 to vector<1x1xf32>
    %3 = "tpu.prng_random_bits"() : () -> vector<8x256xi32>
    %c9_i32 = arith.constant 9 : i32
    %4 = vector.broadcast %c9_i32 : i32 to vector<8x256xi32>
    %5 = arith.shrui %3, %4 : vector<8x256xi32>
    %c1065353216_i32 = arith.constant 1065353216 : i32
    %6 = vector.broadcast %c1065353216_i32 : i32 to vector<8x256xi32>
    %7 = arith.ori %5, %6 : vector<8x256xi32>
    %8 = tpu.bitcast %7 : vector<8x256xi32> -> vector<8x256xf32>
    %cst_2 = arith.constant 1.000000e+00 : f32
    %9 = vector.broadcast %cst_2 : f32 to vector<8x256xf32>
    %10 = arith.subf %8, %9 : vector<8x256xf32>
    %11 = arith.subf %2, %1 : vector<1x1xf32>
    %12 = vector.broadcast %11 : vector<1x1xf32> to vector<8x256xf32>
    %13 = arith.mulf %10, %12 : vector<8x256xf32>
    %14 = vector.broadcast %1 : vector<1x1xf32> to vector<8x256xf32>
    %15 = arith.addf %13, %14 : vector<8x256xf32>
    %16 = vector.broadcast %1 : vector<1x1xf32> to vector<8x256xf32>
    %17 = arith.maximumf %16, %15 : vector<8x256xf32>
    %cst_3 = arith.constant 0.000000e+00 : f32
    %18 = vector.broadcast %cst_3 : f32 to vector<8x256xf32>
    %19 = arith.subf %18, %17 : vector<8x256xf32>
    %20 = arith.mulf %17, %19 : vector<8x256xf32>
    %21 = math.log1p %20 : vector<8x256xf32>
    %cst_4 = arith.constant 0.000000e+00 : f32
    %22 = vector.broadcast %cst_4 : f32 to vector<8x256xf32>
    %23 = arith.subf %22, %21 : vector<8x256xf32>
    %cst_5 = arith.constant 5.000000e+00 : f32
    %24 = vector.broadcast %cst_5 : f32 to vector<8x256xf32>
    %25 = arith.cmpf olt, %23, %24 : vector<8x256xf32>
    %cst_6 = arith.constant 2.500000e+00 : f32
    %26 = vector.broadcast %cst_6 : f32 to vector<8x256xf32>
    %27 = arith.subf %23, %26 : vector<8x256xf32>
    %28 = math.sqrt %23 : vector<8x256xf32>
    %cst_7 = arith.constant 3.000000e+00 : f32
    %29 = vector.broadcast %cst_7 : f32 to vector<8x256xf32>
    %30 = arith.subf %28, %29 : vector<8x256xf32>
    %31 = arith.select %25, %27, %30 : vector<8x256xi1>, vector<8x256xf32>
    %cst_8 = arith.constant 2.81022636E-8 : f32
    %cst_9 = arith.constant -2.00214257E-4 : f32
    %32 = vector.broadcast %cst_8 : f32 to vector<8x256xf32>
    %33 = vector.broadcast %cst_9 : f32 to vector<8x256xf32>
    %34 = arith.select %25, %32, %33 : vector<8x256xi1>, vector<8x256xf32>
    %cst_10 = arith.constant 3.43273939E-7 : f32
    %cst_11 = arith.constant 1.00950558E-4 : f32
    %35 = vector.broadcast %cst_10 : f32 to vector<8x256xf32>
    %36 = vector.broadcast %cst_11 : f32 to vector<8x256xf32>
    %37 = arith.select %25, %35, %36 : vector<8x256xi1>, vector<8x256xf32>
    %38 = arith.mulf %34, %31 : vector<8x256xf32>
    %39 = arith.addf %37, %38 : vector<8x256xf32>
    %cst_12 = arith.constant -3.5233877E-6 : f32
    %cst_13 = arith.constant 0.00134934322 : f32
    %40 = vector.broadcast %cst_12 : f32 to vector<8x256xf32>
    %41 = vector.broadcast %cst_13 : f32 to vector<8x256xf32>
    %42 = arith.select %25, %40, %41 : vector<8x256xi1>, vector<8x256xf32>
    %43 = arith.mulf %39, %31 : vector<8x256xf32>
    %44 = arith.addf %42, %43 : vector<8x256xf32>
    %cst_14 = arith.constant -4.39150654E-6 : f32
    %cst_15 = arith.constant -0.00367342844 : f32
    %45 = vector.broadcast %cst_14 : f32 to vector<8x256xf32>
    %46 = vector.broadcast %cst_15 : f32 to vector<8x256xf32>
    %47 = arith.select %25, %45, %46 : vector<8x256xi1>, vector<8x256xf32>
    %48 = arith.mulf %44, %31 : vector<8x256xf32>
    %49 = arith.addf %47, %48 : vector<8x256xf32>
    %cst_16 = arith.constant 2.1858087E-4 : f32
    %cst_17 = arith.constant 0.00573950773 : f32
    %50 = vector.broadcast %cst_16 : f32 to vector<8x256xf32>
    %51 = vector.broadcast %cst_17 : f32 to vector<8x256xf32>
    %52 = arith.select %25, %50, %51 : vector<8x256xi1>, vector<8x256xf32>
    %53 = arith.mulf %49, %31 : vector<8x256xf32>
    %54 = arith.addf %52, %53 : vector<8x256xf32>
    %cst_18 = arith.constant -0.00125372503 : f32
    %cst_19 = arith.constant -0.0076224613 : f32
    %55 = vector.broadcast %cst_18 : f32 to vector<8x256xf32>
    %56 = vector.broadcast %cst_19 : f32 to vector<8x256xf32>
    %57 = arith.select %25, %55, %56 : vector<8x256xi1>, vector<8x256xf32>
    %58 = arith.mulf %54, %31 : vector<8x256xf32>
    %59 = arith.addf %57, %58 : vector<8x256xf32>
    %cst_20 = arith.constant -0.00417768164 : f32
    %cst_21 = arith.constant 0.00943887047 : f32
    %60 = vector.broadcast %cst_20 : f32 to vector<8x256xf32>
    %61 = vector.broadcast %cst_21 : f32 to vector<8x256xf32>
    %62 = arith.select %25, %60, %61 : vector<8x256xi1>, vector<8x256xf32>
    %63 = arith.mulf %59, %31 : vector<8x256xf32>
    %64 = arith.addf %62, %63 : vector<8x256xf32>
    %cst_22 = arith.constant 0.246640727 : f32
    %cst_23 = arith.constant 1.00167406 : f32
    %65 = vector.broadcast %cst_22 : f32 to vector<8x256xf32>
    %66 = vector.broadcast %cst_23 : f32 to vector<8x256xf32>
    %67 = arith.select %25, %65, %66 : vector<8x256xi1>, vector<8x256xf32>
    %68 = arith.mulf %64, %31 : vector<8x256xf32>
    %69 = arith.addf %67, %68 : vector<8x256xf32>
    %cst_24 = arith.constant 1.50140941 : f32
    %cst_25 = arith.constant 2.83297682 : f32
    %70 = vector.broadcast %cst_24 : f32 to vector<8x256xf32>
    %71 = vector.broadcast %cst_25 : f32 to vector<8x256xf32>
    %72 = arith.select %25, %70, %71 : vector<8x256xi1>, vector<8x256xf32>
    %73 = arith.mulf %69, %31 : vector<8x256xf32>
    %74 = arith.addf %72, %73 : vector<8x256xf32>
    %75 = math.absf %17 : vector<8x256xf32>
    %cst_26 = arith.constant 1.000000e+00 : f32
    %76 = vector.broadcast %cst_26 : f32 to vector<8x256xf32>
    %77 = arith.cmpf oeq, %75, %76 : vector<8x256xf32>
    %cst_27 = arith.constant 0x7F800000 : f32
    %78 = vector.broadcast %cst_27 : f32 to vector<8x256xf32>
    %79 = arith.mulf %78, %17 : vector<8x256xf32>
    %80 = arith.mulf %74, %17 : vector<8x256xf32>
    %81 = arith.select %77, %79, %80 : vector<8x256xi1>, vector<8x256xf32>
    %cst_28 = arith.constant 1.41421354 : f32
    %82 = vector.broadcast %cst_28 : f32 to vector<8x256xf32>
    %83 = arith.mulf %82, %81 : vector<8x256xf32>
    %c0_29 = arith.constant 0 : index
    %c0_30 = arith.constant 0 : index
    %84 = vector.load %arg3[%c0_29, %c0_30] : memref<8x256xf32, #tpu.memory_space<vmem>>, vector<8x256xf32>
    %cst_31 = arith.constant 1.000000e+00 : f32
    %85 = vector.broadcast %cst_31 : f32 to vector<8x256xf32>
    %86 = arith.mulf %85, %83 : vector<8x256xf32>
    %87 = arith.addf %84, %86 : vector<8x256xf32>
    %c0_32 = arith.constant 0 : index
    %c0_33 = arith.constant 0 : index
    %88 = vector.load %arg4[%c0_32, %c0_33] : memref<8x256xf32, #tpu.memory_space<vmem>>, vector<8x256xf32>
    tpu.vector_store %arg4[%c0_32, %c0_33], %87 {strides = array<i32>} : memref<8x256xf32, #tpu.memory_space<vmem>>, vector<8x256xf32>,
    return
  }
  func.func @transform_0(%arg0: i32, %arg1: i32, %arg2: memref<1xi32, #tpu.memory_space<smem>>) -> (i32, i32) {
    %c0_i32 = arith.constant 0 : i32
    return %arg0, %arg1 : i32, i32
  }
  func.func @transform_1(%arg0: i32, %arg1: i32, %arg2: memref<1xi32, #tpu.memory_space<smem>>) -> (i32, i32) {
    %c0_i32 = arith.constant 0 : i32
    return %arg0, %arg1 : i32, i32
  }
}

module attributes {stable_mosaic.version = 11 : i64} {
  func.func @_noise_add_kernel(%arg0: i32, %arg1: i32, %arg2: memref<8x256xf32, #tpu.memory_space<vmem>>, %arg3: memref<8x256xf32, #tpu.memory_space<vmem>>, %arg4: memref<8x256xf32, #tpu.memory_space<vmem>>) attributes {dimension_semantics = [#tpu.dimension_semantics<parallel>, #tpu.dimension_semantics<parallel>], iteration_bounds = array<i64: 1, 1>, scalar_prefetch = 0 : i64, scratch_operands = 0 : i64, tpu.core_type = #tpu.core_type<tc>, window_params = [{transform_indices = @transform_0, window_bounds = array<i64: 8, 256>}, {transform_indices = @transform_1, window_bounds = array<i64: 8, 256>}, {transform_indices = @transform_2, window_bounds = array<i64: 8, 256>}]} {
    %c0 = arith.constant 0 : index
    %c0_0 = arith.constant 0 : index
    %0 = vector.load %arg2[%c0, %c0_0] : memref<8x256xf32, #tpu.memory_space<vmem>>, vector<8x256xf32>
    %c0_1 = arith.constant 0 : index
    %c0_2 = arith.constant 0 : index
    %1 = vector.load %arg3[%c0_1, %c0_2] : memref<8x256xf32, #tpu.memory_space<vmem>>, vector<8x256xf32>
    %2 = arith.addf %0, %1 : vector<8x256xf32>
    %c0_3 = arith.constant 0 : index
    %c0_4 = arith.constant 0 : index
    %3 = vector.load %arg4[%c0_3, %c0_4] : memref<8x256xf32, #tpu.memory_space<vmem>>, vector<8x256xf32>
    tpu.vector_store %arg4[%c0_3, %c0_4], %2 {strides = array<i32>} : memref<8x256xf32, #tpu.memory_space<vmem>>, vector<8x256xf32>,
    return
  }
  func.func @transform_0(%arg0: i32, %arg1: i32) -> (i32, i32) {
    %c0_i32 = arith.constant 0 : i32
    return %arg0, %arg1 : i32, i32
  }
  func.func @transform_1(%arg0: i32, %arg1: i32) -> (i32, i32) {
    %c0_i32 = arith.constant 0 : i32
    return %arg0, %arg1 : i32, i32
  }
  func.func @transform_2(%arg0: i32, %arg1: i32) -> (i32, i32) {
    %c0_i32 = arith.constant 0 : i32
    return %arg0, %arg1 : i32, i32
  }
}

</mosaic_0001>

<bundles_post_ra>
// kernel: tpu_custom_call.1
= control target key start
LH: loop header
LB: loop body
LE: loop exit
PB: predicated region body
PF: predicated region fallthrough
CT: control target
= control target key end

     0   :  { %7 = vsyncpa [#allocation3], 0  ;;  %s189_s0 = inlined_call_operand.hbm [shape: f32[8,256], index: 0, kind: input, shape index: {}]   ;;  %s190_s1 = inlined_call_operand.hbm [shape: f32[8,256], index: 1, kind: input, shape index: {}]   ;;  %s191_s2 = inlined_call_operand.hbm [shape: f32[8,256], index: 2, kind: output, shape index: {}]  }
   0x1   :  { %8 = vsyncpa [#allocation6], 0 }
   0x2   :  { %9 = vsyncpa [#allocation4], 0  ;;  %s135_s9 = smov [#allocation2]   ;;  %s136_s11 = smov [#allocation5]  }
   0x3   :  { %s16_s10 = sshll.u32 %s135_s9, 4  ;;  %s26_s12 = sshll.u32 %s136_s11, 4  ;;  %s17_s10 = int_to_ptr.vmem [resolvable:$true] %s16_s10  ;;  %s27_s12 = int_to_ptr.vmem [resolvable:$true] %s26_s12 }
   0x4   :  { %s63_s15 = scalar_lea.hbm %s189_s0, 256 }
   0x5   :  { %p64_p0 = scmp.ne.s32.totalorder %s189_s0, %s63_s15  ;;  %p67_p1 = scmp.lt.u32.totalorder %s63_s15, %s189_s0 }
   0x7   :  { %p69_p2 = pnand %p67_p1, %p64_p0 }
   0x9   :  { %72 = shalt.err (!%p69_p2)
}
   0xa   :  { %s73_s20 = scalar_lea.vmem %s17_s10, 256  ;;  %p78_p4 = scmp.lt.s32.totalorder %s17_s10, %s17_s10 }
   0xb   :  { %p74_p3 = scmp.ne.s32.totalorder %s17_s10, %s73_s20  ;;  %p79_p5 = scmp.lt.s32.totalorder %s73_s20, %s73_s20 }
   0xd   :  { %p80_p6 = por %p79_p5, %p78_p4 }
   0xf   :  { %p81_p7 = pnand %p80_p6, %p74_p3 }
  0x11   :  { %84 = shalt.err (!%p81_p7)
}
  0x12   :  { %19 = dma.hbm_to_vmem [thread:$0]  %s189_s0, 256, %s17_s10, [#allocation3]  }
  0x13   :  { %s85_s25 = scalar_lea.hbm %s190_s1, 256 }
  0x14   :  { %p86_p8 = scmp.ne.s32.totalorder %s190_s1, %s85_s25  ;;  %p89_p9 = scmp.lt.u32.totalorder %s85_s25, %s190_s1 }
  0x16   :  { %p91_p10 = pnand %p89_p9, %p86_p8 }
  0x18   :  { %94 = shalt.err (!%p91_p10)
}
  0x19   :  { %s95_s30 = scalar_lea.vmem %s27_s12, 256  ;;  %p100_p12 = scmp.lt.s32.totalorder %s27_s12, %s27_s12 }
  0x1a   :  { %p96_p11 = scmp.ne.s32.totalorder %s27_s12, %s95_s30  ;;  %p101_p13 = scmp.lt.s32.totalorder %s95_s30, %s95_s30 }
  0x1c   :  { %p102_p0 = por %p101_p13, %p100_p12 }
  0x1e   :  { %p103_p1 = pnand %p102_p0, %p96_p11 }
  0x20   :  { %106 = shalt.err (!%p103_p1)
}
  0x21   :  { %29 = dma.hbm_to_vmem [thread:$0]  %s190_s1, 256, %s27_s12, [#allocation6]  }
  0x22   :  { %129 = dma.done.wait [#allocation3], 256  }
  0x23   :  { %130 = vsyncadd [#allocation3], 4294967040 }
  0x24   :  { %131 = dma.done.wait [#allocation6], 256  }
  0x25   :  { %132 = vsyncadd [#allocation6], 4294967040  ;;  %s137_s4 = smov [#allocation7]   ;;  %v36_v0 = vld [vmem:[#allocation2] sm:$0xff]  ;;  %v38_v1 = vld [vmem:[#allocation5] sm:$0xff] }
  0x26   :  { %s50_s5 = sshll.u32 %s137_s4, 4  ;;  %v37_v2 = vld [vmem:[#allocation2 + $0x8] sm:$0xff]  ;;  %v40_v3 = vadd.f32 %v38_v1, %v36_v0  ;;  %v39_v4 = vld [vmem:[#allocation5 + $0x8] sm:$0xff]  ;;  %s51_s5 = int_to_ptr.vmem [resolvable:$true] %s50_s5 }
  0x27   :  { %v41_v5 = vadd.f32 %v39_v4, %v37_v2  ;;  %s107_s6 = scalar_lea.vmem %s51_s5, 256  ;;  %p112_p3 = scmp.lt.s32.totalorder %s51_s5, %s51_s5 }
  0x28   :  { %42 = vst [vmem:[#allocation7] sm:$0xff] %v40_v3  ;;  %p108_p2 = scmp.ne.s32.totalorder %s51_s5, %s107_s6  ;;  %p113_p4 = scmp.lt.s32.totalorder %s107_s6, %s107_s6 }
  0x29   :  { %43 = vst [vmem:[#allocation7 + $0x8] sm:$0xff] %v41_v5 }
  0x2a   :  { %p114_p5 = por %p113_p4, %p112_p3 }
  0x2c   :  { %p115_p6 = pnand %p114_p5, %p108_p2 }
  0x2e   :  { %118 = shalt.err (!%p115_p6)
}
  0x2f   :  { %s119_s8 = scalar_lea.hbm %s191_s2, 256 }
  0x30   :  { %p120_p7 = scmp.ne.s32.totalorder %s191_s2, %s119_s8  ;;  %p123_p8 = scmp.lt.u32.totalorder %s119_s8, %s191_s2 }
  0x32   :  { %p125_p9 = pnand %p123_p8, %p120_p7 }
  0x34   :  { %128 = shalt.err (!%p125_p9)
}
  0x35   :  { %53 = dma.vmem_to_hbm [thread:$0]  %s51_s5, 256, %s191_s2, [#allocation4]  }
  0x36   :  { %133 = dma.done.wait [#allocation4], 256  }
  0x37   :  { %134 = vsyncadd [#allocation4], 4294967040 }
  0x38   :  { %57 = vsyncpa [#allocation3], 1 }
  0x39   :  { %58 = vsyncpa [#allocation6], 1 }
  0x3a   :  { %59 = vsyncpa [#allocation4], 1 }

</bundles_post_ra>
